<compile_context>
chip_gen: v5e
topology: v5e:2x2
jax: 0.10.0
libtpu: 0.0.40
codegen_flags: <defaults>
</compile_context>

<pallas_src>
import functools

import jax
import jax.numpy as jnp
from jax.experimental import pallas as pl
from jax.experimental.pallas import tpu as pltpu

_MIB = 1024 * 1024


def _focal_loss_kernel(logits_ref, targets_ref, alpha_t_ref, out_ref, *,
                       gamma, n_valid, block_rows):
    i = pl.program_id(0)

    logits = logits_ref[...].astype(jnp.float32)        # (tm, C)
    targets = targets_ref[...]                          # (tm, 1) int32
    alpha_t = alpha_t_ref[...].astype(jnp.float32)      # (tm, 1)

    # numerically-stable cross entropy: ce = logsumexp(z) - z[target]
    m = jnp.max(logits, axis=1, keepdims=True)
    z = logits - m
    lse = jnp.log(jnp.sum(jnp.exp(z), axis=1, keepdims=True))
    # z[target] via select + lane reduce (no f32 one-hot materialization / multiply)
    col = jax.lax.broadcasted_iota(jnp.int32, z.shape, dimension=1)
    tz = jnp.sum(jnp.where(col == targets, z, 0.0), axis=1, keepdims=True)
    ce = lse - tz                                        # (tm, 1)

    pt = jnp.exp(-ce)                                    # (tm, 1)
    omp = jnp.maximum(1.0 - pt, 0.0)                     # clamp ULP negatives
    g = float(gamma)
    if g == 2.0:
        w = omp * omp                                    # VPU multiply, no EUP pow
    elif g == 1.0:
        w = omp
    elif g == 0.0:
        w = jnp.ones_like(omp)
    else:
        w = omp ** g

    focal = alpha_t * w * ce                             # (tm, 1)

    # single masking mechanism: zero rows past N (ragged last tile reads stale
    # VMEM; jnp.where is a select, so garbage/NaN rows cannot leak into the sum)
    row = jax.lax.broadcasted_iota(jnp.int32, focal.shape, dimension=0) + i * block_rows
    focal = jnp.where(row < n_valid, focal, 0.0)

    # per-tile partial sum into a lane-dense, (8,128)-aligned output block
    partial = jnp.sum(focal)
    out_ref[...] = jnp.broadcast_to(partial, out_ref.shape).astype(out_ref.dtype)


def _round_up(x, m):
    return ((x + m - 1) // m) * m


def _vmem_capacity_bytes():
    try:
        return int(pltpu.get_tpu_info().vmem_capacity_bytes)
    except Exception:
        return 64 * _MIB                                 # conservative (v7x-sized) fallback


def _choose_block_rows(n, c, itemsize, vmem_cap):
    """Largest row tile whose *real* VMEM working set stays inside a safe budget."""
    c_pad = _round_up(max(c, 1), 128)                    # lane padding Mosaic applies
    # Working-set budget: half of physical VMEM, capped at 64 MiB (v5e/v6e = 64 MiB,
    # v7x = 32 MiB) -> headroom for compiler scratch + keeps double-buffering alive.
    working_budget = min(vmem_cap // 2, 64 * _MIB)
    # Bytes per tile row:
    #   logits stream        : 2 pipeline buffers x c_pad x itemsize
    #   f32 temporaries      : ~4 x c_pad x 4   (upcast, z, exp(z), select)
    #   targets+alpha streams: 2 streams x 2 buffers x 128 lanes x 4 B
    per_row = 2 * c_pad * itemsize + 4 * c_pad * 4 + 2 * 2 * 128 * 4
    block_rows = working_budget // per_row
    block_rows = max(8, (block_rows // 8) * 8)            # sublane alignment
    # Always leave >= 2 grid steps (pipelining; both TensorCores on v7x).
    half_n = _round_up(max(-(-n // 2), 1), 8)
    block_rows = min(block_rows, half_n)
    block_rows = min(block_rows, _round_up(n, 8))
    return max(8, block_rows)


def focal_loss(logits, targets, alpha=None, gamma=2.0, *, block_rows=None):
    """logits: [N, C] float (f32 or bf16), targets: [N] int, alpha: [C] float or None.
    Returns the scalar mean focal loss (matches the PyTorch FocalLoss forward)."""
    N, C = logits.shape
    targets = targets.astype(jnp.int32)

    # per-sample alpha gather is a trivial XLA op; keeps the kernel to minimal work
    if alpha is not None:
        alpha_t = jnp.asarray(alpha, jnp.float32)[targets]       # [N]
    else:
        alpha_t = jnp.ones((N,), jnp.float32)

    vmem_cap = _vmem_capacity_bytes()
    if block_rows is None:
        block_rows = _choose_block_rows(N, C, jnp.dtype(logits.dtype).itemsize, vmem_cap)

    num_tiles = pl.cdiv(N, block_rows)

    # No wrapper-side padding: Pallas handles the ragged last block, the kernel masks it.
    targets_2d = targets.reshape(N, 1)
    alpha_t_2d = alpha_t.reshape(N, 1)

    kernel = functools.partial(
        _focal_loss_kernel, gamma=float(gamma), n_valid=N, block_rows=block_rows)

    # ~48 MiB on v7x (64 MiB VMEM), 64 MiB on v5e/v6e (128 MiB VMEM)
    vmem_limit = min((vmem_cap * 3) // 4, 64 * _MIB)

    partials = pl.pallas_call(
        kernel,
        out_shape=jax.ShapeDtypeStruct((8 * num_tiles, 128), jnp.float32),
        grid_spec=pltpu.PrefetchScalarGridSpec(
            num_scalar_prefetch=0,
            grid=(num_tiles,),
            in_specs=[
                pl.BlockSpec((block_rows, C), lambda i: (i, 0)),   # logits tile
                pl.BlockSpec((block_rows, 1), lambda i: (i, 0)),   # targets tile
                pl.BlockSpec((block_rows, 1), lambda i: (i, 0)),   # gathered alpha_t tile
            ],
            out_specs=pl.BlockSpec((8, 128), lambda i: (i, 0)),    # per-tile partial-sum slab
        ),
        compiler_params=pltpu.CompilerParams(
            dimension_semantics=("parallel",),
            vmem_limit_bytes=int(vmem_limit),
        ),
    )(logits, targets_2d, alpha_t_2d)

    # one partial per tile (first row / first lane of each (8,128) block)
    total = jnp.sum(partials[::8, 0])
    return total / N


def _focal_loss_ref(logits, targets, alpha=None, gamma=2.0):
    """Pure-JAX reference matching the PyTorch FocalLoss forward."""
    logp = jax.nn.log_softmax(logits.astype(jnp.float32), axis=-1)
    ce = -jnp.take_along_axis(logp, targets[:, None].astype(jnp.int32), axis=1)[:, 0]
    pt = jnp.exp(-ce)
    alpha_t = jnp.asarray(alpha, jnp.float32)[targets] if alpha is not None else 1.0
    return jnp.mean(alpha_t * (1.0 - pt) ** gamma * ce)


if __name__ == "__main__":
    key = jax.random.PRNGKey(0)
    k1, k2, k3, k4 = jax.random.split(key, 4)

    # primary test: small shapes, per-class alpha (matches the module spec)
    N, C = 16, 8
    logits = jax.random.normal(k1, (N, C), dtype=jnp.float32)
    targets = jax.random.randint(k2, (N,), 0, C, dtype=jnp.int32)
    alpha = jnp.linspace(0.5, 1.5, C, dtype=jnp.float32)

    loss = jax.block_until_ready(focal_loss(logits, targets, alpha, gamma=2.0))
    ref = _focal_loss_ref(logits, targets, alpha, gamma=2.0)
    assert jnp.allclose(loss, ref, rtol=2e-5, atol=1e-6), (loss, ref)

    # secondary test: N not a tile multiple, no alpha (exercises the ragged-tile mask path)
    N2, C2 = 13, 8
    logits2 = jax.random.normal(k3, (N2, C2), dtype=jnp.float32)
    targets2 = jax.random.randint(k4, (N2,), 0, C2, dtype=jnp.int32)
    loss2 = jax.block_until_ready(focal_loss(logits2, targets2, None, gamma=2.0))
    ref2 = _focal_loss_ref(logits2, targets2, None, gamma=2.0)
    assert jnp.allclose(loss2, ref2, rtol=2e-5, atol=1e-6), (loss2, ref2)

    print("KERNEL_OK")
</pallas_src>

<mosaic_0001>
module attributes {stable_mosaic.version = 11 : i64} {
  func.func @_focal_loss_kernel(%arg0: i32, %arg1: memref<8x8xf32, #tpu.memory_space<vmem>>, %arg2: memref<8x1xi32, #tpu.memory_space<vmem>>, %arg3: memref<8x1xf32, #tpu.memory_space<vmem>>, %arg4: memref<8x128xf32, #tpu.memory_space<vmem>>) attributes {dimension_semantics = [#tpu.dimension_semantics<parallel>], iteration_bounds = array<i64: 2>, scalar_prefetch = 0 : i64, scratch_operands = 0 : i64, tpu.core_type = #tpu.core_type<tc>, window_params = [{transform_indices = @transform_0, window_bounds = array<i64: 8, 8>}, {transform_indices = @transform_1, window_bounds = array<i64: 8, 1>}, {transform_indices = @transform_2, window_bounds = array<i64: 8, 1>}, {transform_indices = @transform_3, window_bounds = array<i64: 8, 128>}]} {
    %c0 = arith.constant 0 : index
    %c0_0 = arith.constant 0 : index
    %0 = vector.load %arg1[%c0, %c0_0] : memref<8x8xf32, #tpu.memory_space<vmem>>, vector<8x8xf32>
    %c0_1 = arith.constant 0 : index
    %c0_2 = arith.constant 0 : index
    %1 = vector.load %arg2[%c0_1, %c0_2] : memref<8x1xi32, #tpu.memory_space<vmem>>, vector<8x1xi32>
    %c0_3 = arith.constant 0 : index
    %c0_4 = arith.constant 0 : index
    %2 = vector.load %arg3[%c0_3, %c0_4] : memref<8x1xf32, #tpu.memory_space<vmem>>, vector<8x1xf32>
    %cst = arith.constant dense<0xFF800000> : vector<8xf32>
    %3 = vector.multi_reduction <maximumf>, %0, %cst [1] : vector<8x8xf32> to vector<8xf32>
    %4 = vector.shape_cast %3 : vector<8xf32> to vector<8x1xf32>
    %5 = vector.broadcast %4 : vector<8x1xf32> to vector<8x8xf32>
    %6 = arith.subf %0, %5 : vector<8x8xf32>
    %7 = math.exp %6 : vector<8x8xf32>
    %cst_5 = arith.constant dense<0.000000e+00> : vector<8xf32>
    %8 = vector.multi_reduction <add>, %7, %cst_5 [1] : vector<8x8xf32> to vector<8xf32>
    %9 = vector.shape_cast %8 : vector<8xf32> to vector<8x1xf32>
    %10 = math.log %9 : vector<8x1xf32>
    %11 = tpu.iota {dimensions = array<i32: 1>} : vector<8x8xi32>
    %12 = vector.broadcast %1 : vector<8x1xi32> to vector<8x8xi32>
    %13 = arith.cmpi eq, %11, %12 : vector<8x8xi32>
    %cst_6 = arith.constant 0.000000e+00 : f32
    %14 = vector.broadcast %cst_6 : f32 to vector<8x8xf32>
    %15 = arith.select %13, %6, %14 : vector<8x8xi1>, vector<8x8xf32>
    %cst_7 = arith.constant dense<0.000000e+00> : vector<8xf32>
    %16 = vector.multi_reduction <add>, %15, %cst_7 [1] : vector<8x8xf32> to vector<8xf32>
    %17 = vector.shape_cast %16 : vector<8xf32> to vector<8x1xf32>
    %18 = arith.subf %10, %17 : vector<8x1xf32>
    %cst_8 = arith.constant 0.000000e+00 : f32
    %19 = vector.broadcast %cst_8 : f32 to vector<8x1xf32>
    %20 = arith.subf %19, %18 : vector<8x1xf32>
    %21 = math.exp %20 : vector<8x1xf32>
    %cst_9 = arith.constant 1.000000e+00 : f32
    %22 = vector.broadcast %cst_9 : f32 to vector<8x1xf32>
    %23 = arith.subf %22, %21 : vector<8x1xf32>
    %cst_10 = arith.constant 0.000000e+00 : f32
    %24 = vector.broadcast %cst_10 : f32 to vector<8x1xf32>
    %25 = arith.maximumf %23, %24 : vector<8x1xf32>
    %26 = arith.mulf %25, %25 : vector<8x1xf32>
    %27 = arith.mulf %2, %26 : vector<8x1xf32>
    %28 = arith.mulf %27, %18 : vector<8x1xf32>
    %29 = tpu.iota {dimensions = array<i32: 0>} : vector<8x1xi32>
    %c8_i32 = arith.constant 8 : i32
    %30 = arith.muli %arg0, %c8_i32 : i32
    %31 = vector.broadcast %30 : i32 to vector<8x1xi32>
    %32 = arith.addi %29, %31 : vector<8x1xi32>
    %c16_i32 = arith.constant 16 : i32
    %33 = vector.broadcast %c16_i32 : i32 to vector<8x1xi32>
    %34 = arith.cmpi slt, %32, %33 : vector<8x1xi32>
    %cst_11 = arith.constant 0.000000e+00 : f32
    %35 = vector.broadcast %cst_11 : f32 to vector<8x1xf32>
    %36 = arith.select %34, %28, %35 : vector<8x1xi1>, vector<8x1xf32>
    %37 = vector.shape_cast %36 : vector<8x1xf32> to vector<1x8x1xf32>
    %cst_12 = arith.constant dense<0.000000e+00> : vector<1xf32>
    %38 = vector.multi_reduction <add>, %37, %cst_12 [1, 2] : vector<1x8x1xf32> to vector<1xf32>
    %39 = vector.shape_cast %38 : vector<1xf32> to vector<1x1x1xf32>
    %40 = vector.extract %39[0, 0, 0] : f32 from vector<1x1x1xf32>
    %41 = vector.broadcast %40 : f32 to vector<8x128xf32>
    %c0_13 = arith.constant 0 : index
    %c0_14 = arith.constant 0 : index
    %42 = vector.load %arg4[%c0_13, %c0_14] : memref<8x128xf32, #tpu.memory_space<vmem>>, vector<8x128xf32>
    tpu.vector_store %arg4[%c0_13, %c0_14], %41 {strides = array<i32>} : memref<8x128xf32, #tpu.memory_space<vmem>>, vector<8x128xf32>,
    return
  }
  func.func @transform_0(%arg0: i32) -> (i32, i32) {
    %c0_i32 = arith.constant 0 : i32
    %c0_i32_0 = arith.constant 0 : i32
    return %arg0, %c0_i32 : i32, i32
  }
  func.func @transform_1(%arg0: i32) -> (i32, i32) {
    %c0_i32 = arith.constant 0 : i32
    %c0_i32_0 = arith.constant 0 : i32
    return %arg0, %c0_i32 : i32, i32
  }
  func.func @transform_2(%arg0: i32) -> (i32, i32) {
    %c0_i32 = arith.constant 0 : i32
    %c0_i32_0 = arith.constant 0 : i32
    return %arg0, %c0_i32 : i32, i32
  }
  func.func @transform_3(%arg0: i32) -> (i32, i32) {
    %c0_i32 = arith.constant 0 : i32
    %c0_i32_0 = arith.constant 0 : i32
    return %arg0, %c0_i32 : i32, i32
  }
}

</mosaic_0001>

<bundles_post_ra>
// kernel: tpu_custom_call.1
= control target key start
LH: loop header
LB: loop body
LE: loop exit
PB: predicated region body
PF: predicated region fallthrough
CT: control target
= control target key end

     0   :  { %8 = vsyncpa [#allocation3], 0  ;;  %s599_s0 = inlined_call_operand.vmem [shape: f32[16,8], index: 0, kind: input, shape index: {}]   ;;  %s600_s1 = inlined_call_operand.vmem [shape: s32[16,1], index: 1, kind: input, shape index: {}]   ;;  %s601_s2 = inlined_call_operand.vmem [shape: f32[16,1], index: 2, kind: input, shape index: {}]   ;;  %s602_s3 = inlined_call_operand.hbm [shape: f32[16,128], index: 3, kind: output, shape index: {}]  }
   0x1   :  { %10 = vsyncpa [#allocation3 + $0x1], 0  ;;  %s500_s12 = smov 0   ;;  %s502_s13 = smov 0  }
   0x2   :  { %s504_s14 = smov 0   ;;  %s506_s15 = smov 0  }
   0x3 LB: > { %s521_s16 = sadd.s32 4294967295, %s477_s15   ;;  %s353_s17 = sadd.s32 4294967294, %s477_s15   ;;  %s477_s15 = sphi %s506_s15, %s608_s15   ;;  %s473_s14 = sphi %s504_s14, %s607_s14   ;;  %s469_s13 = sphi %s502_s13, %s606_s13   ;;  %s465_s12 = sphi %s500_s12, %s605_s12  }
   0x4   : > { %s525_s18 = sadd.s32 1, %s477_s15   ;;  %s101_s19 = sadd.s32 1, %s473_s14 }
   0x5   : > { %s98_s20 = ssub.s32 %s477_s15, %s525_s18  ;;  %p111_p0 = scmp.ne.s32.totalorder %s473_s14, %s469_s13 }
   0x6   : > { %p99_p1 = scmp.eq.s32.totalorder %s98_s20, 0  ;;  %p112_p2 = scmp.eq.s32.totalorder %s521_s16, 1 }
   0x7   : > { %p117_p3 = scmp.ne.s32.totalorder %s469_s13, %s465_s12  ;;  %p118_p4 = scmp.eq.s32.totalorder %s353_s17, 1 }
   0x8   : > { %s536_s21 = scalar_select %p99_p1, %s473_s14, %s101_s19  }
   0x9   : > { %p538_p5 = por %p112_p2, %p111_p0  ;;  %p542_p6 = por %p118_p4, %p117_p3 }
   0xa   : > { %p356_p7 = scmp.ge.s32.totalorder %s477_s15, 1  ;;  %p157_p8 = scmp.lt.s32.totalorder %s477_s15, 3 }
   0xc   : > { %p158_p9 = pnand %p356_p7, %p157_p8 }
   0xd   : > { %p188_p10 = scmp.lt.s32.totalorder (!%p158_p9), %s521_s16, 1  ;;  %s361_s5 = sshll.u32 (!%p158_p9), %s521_s16, 3 }
   0xe   : > { %161 = sbr.rel (%p158_p9) target bundleno = 486 (0x1e6), region = 32  ;;  %s185_s9 = sand.u32 (!%p158_p9), 1, %s469_s13  }
   0xf   : > { %s357_s10 = sshll.u32 (!%p158_p9), %s185_s9, 3  ;;  %s265_s17 = scalar_lea.hbm (!%p158_p9), %s602_s3, %s361_s5 }
  0x10   : > { %s187_s19 = scalar_lea.vmem (!%p158_p9), [#allocation2], %s357_s10  ;;  %s255_s26 = scalar_lea.sflag (!%p158_p9), [#allocation3], %s185_s9 }
  0x11   : > { %s267_s20 = sshll.u32 (!%p158_p9), %s187_s19, 4  ;;  %s268_s20 = int_to_ptr.vmem [resolvable:$true] %s267_s20 }
  0x13   : > { %v479_v0 = vmov 0   ;;  %s189_s24 = scalar_select %p188_p10, %s521_s16, 1  ;;  %vm203_vm0 = vcmask 64512   ;;  %v215_v9 = vlaneseq  ;;  %v237_v24 = vstv %s361_s5 }
  0x14   : > { %408 = vset.pattern.permute.xlu0 %v479_v0  ;;  %vm241_vm3 = vcmask 7168  }
  0x15   : > { %s550_s25 = sshll.u32 %s189_s24, 3  ;;  %v216_v10 = vand.u32 127, %v215_v9  ;;  %v235_v22 = vshrl.u32 %v215_v9, 7  ;;  %s269_s24 = sshll.u32 %s265_s17, 4  ;;  %s270_s24 = int_to_ptr.hbm [resolvable:$true] %s269_s24 }
  0x16   : > { %s191_s28 = scalar_lea.vmem %s599_s0, %s550_s25  ;;  %s195_s4 = scalar_lea.vmem %s600_s1, %s550_s25 }
  0x17   : > { %v200_v1 = vld [vmem:[%s191_s28] sm:$0xff]  ;;  %s199_s8 = scalar_lea.vmem %s601_s2, %s550_s25  ;;  %v238_v27 = vadd.s32 %v237_v24, %v235_v22  ;;  %s429_s27 = sshra.s32 %s270_s24, 4  ;;  %s430_s27 = int_to_ptr.hbm [resolvable:$true] %s429_s27 }
  0x18   : > { %v204_v2 = vsel %vm203_vm0, %v200_v1, -inf  ;;  %v201_v3 = vld [vmem:[%s195_s4] sm:$0xff]  ;;  %s431_s28 = scalar_lea.hbm %s430_s27, 8  ;;  %s435_s4 = scalar_lea.hbm %s602_s3, 16 }
  0x19   : > { %205 = vmax.xlane.f32.xlu0 %v204_v2  ;;  %v202_v26 = vld [vmem:[%s199_s8] sm:$0xff]  ;;  %vm239_vm2 = vcmp.lt.s32.totalorder %v238_v27, 16  ;;  %p432_p11 = scmp.ne.s32.totalorder %s430_s27, %s431_s28  ;;  %p436_p0 = scmp.lt.s32.totalorder %s430_s27, %s602_s3 }
  0x1a   : > { %p437_p1 = scmp.lt.s32.totalorder %s435_s4, %s431_s28 }
  0x1b   : > { %p433_p12 = pnand %p432_p11, %p538_p5 }
  0x1c   : > { %p438_p2 = por %p437_p1, %p436_p0 }
  0x1d   : > { %p434_p13 = pneg %p433_p12 }
  0x1f   : > { %p439_p3 = pnand %p438_p2, %p434_p13 }
  0x2d   : > { %218 = vperm.xlu0 %408, %v201_v3  }
  0x8c   : > { %v206_v4 = vpop.xlane.xlu0 %205 }
  0x8d   : > { %v207_v5 = vsub.f32 %v200_v1, %v206_v4 }
  0x8f   : > { %v208_v6 = vmul.f32 1.442695, %v207_v5 }
  0x91   : > { %409 = vpow2.f32 %v208_v6 }
  0x97   : > { %v410_v7 = vpop.eup %409 }
  0x98   : > { %v210_v8 = vsel %vm203_vm0, %v410_v7, 0.0 }
  0x99   : > { %211 = vadd.xlane.f32.xlu1 %v210_v8 }
  0x9f   : > { %v219_v11 = vpop.permute.xlu0 %218 }
  0xa0   : > { %vm220_vm1 = vcmp.eq.s32.totalorder %v216_v10, %v219_v11 }
  0xa1   : > { %v221_v12 = vsel %vm220_vm1, %v207_v5, 0.0 }
  0xa2   : > { %v222_v13 = vsel %vm203_vm0, %v221_v12, 0.0 }
  0xa3   : > { %223 = vadd.xlane.f32.xlu1 %v222_v13 }
 0x10c   : > { %v212_v14 = vpop.xlane.xlu1 %211 }
 0x10d   : > { %411 = vlog2.f32 %v212_v14 }
 0x113   : > { %v412_v15 = vpop.eup %411 }
 0x114   : > { %v214_v16 = vmul.f32 0.6931472, %v412_v15 }
 0x116   : > { %v224_v17 = vpop.xlane.xlu1 %223 }
 0x117   : > { %v225_v18 = vsub.f32 %v214_v16, %v224_v17 }
 0x119   : > { %v226_v19 = vsub.f32 0.0, %v225_v18 }
 0x11b   : > { %v227_v20 = vmul.f32 1.442695, %v226_v19 }
 0x11d   : > { %413 = vpow2.f32 %v227_v20 }
 0x123   : > { %v414_v21 = vpop.eup %413 }
 0x124   : > { %v229_v23 = vsub.f32 1.0, %v414_v21 }
 0x126   : > { %v230_v25 = vmax.f32 %v229_v23, 0.0 }
 0x128   : > { %v231_v28 = vmul.f32 %v230_v25, %v230_v25 }
 0x12a   : > { %v232_v29 = vmul.f32 %v231_v28, %v202_v26 }
 0x12c   : > { %v233_v30 = vmul.f32 %v232_v29, %v225_v18 }
 0x12e   : > { %v240_v31 = vsel %vm239_vm2, %v233_v30, 0.0 }
 0x12f   : > { %v242_v32 = vsel %vm241_vm3, %v240_v31, 0.0 }
 0x130   : > { %243 = vadd.xlane.f32.xlu2 %v242_v32 }
 0x1a3   : > { %v244_v33 = vpop.xlane.xlu2 %243 }
 0x1a4   : > { %v245_v34 = vrot.slane %v244_v33, 4 }
 0x1a6   : > { %v246_v35 = vadd.f32 %v245_v34, %v244_v33 }
 0x1a8   : > { %v247_v36 = vrot.slane %v246_v35, 2 }
 0x1aa   : > { %v248_v37 = vadd.f32 %v247_v36, %v246_v35 }
 0x1ac   : > { %v249_v38 = vrot.slane %v248_v37, 1 }
 0x1ae   : > { %v250_v39 = vadd.f32 %v249_v38, %v248_v37 }
 0x1b0   : > { %366 = vpush %v250_v39 }
 0x1e1   : > { %s367_s25 = spop %366 }
 0x1e2   : > { %v252_v40 = vstv %s367_s25 }
 0x1e3   : > { %253 = vst [vmem:[%s187_s19] sm:$0xff] %v252_v40 }
 0x1e4   : > { %442 = shalt.err (!%p439_p3)
}
 0x1e5   : > { %368 = dma.vmem_to_hbm [thread:$0]  (%p538_p5), %s268_s20, 128, %s270_s24, %s255_s26  }
 0x1e6 PF: > { %p374_p4 = scmp.ge.s32.totalorder %s477_s15, 2  ;;  %s281_s7 = sand.u32 1, %s465_s12  }
 0x1e7   : > { %s282_s8 = scalar_lea.sflag [#allocation3], %s281_s7 }
 0x1e8   : > { %p371_p7 = pnand %p374_p4, %p542_p6 }
 0x1ea   : > { %p372_p8 = pneg %p371_p7 }
 0x1ec   : > { %460 = dma.done.wait (%p372_p8), %s282_s8, 128  }
 0x1ed   : > { %462 = vsyncadd (%p372_p8), %s282_s8, 4294967168  ;;  %p13_p9 = scmp.ge.s32.totalorder %s525_s18, 4   ;;  %s605_s12 = smov %s469_s13 }
 0x1ee   : > { %s606_s13 = smov %s473_s14  ;;  %s607_s14 = smov %s536_s21 }
 0x1ef   : > { %s608_s15 = smov %s525_s18  ;;  %15 = sbr.rel (!%p13_p9) target bundleno = 3 (0x3), region = 73 }
 0x1f4   :  { %288 = vsyncpa [#allocation3], 1 }
 0x1f5   :  { %290 = vsyncpa [#allocation3 + $0x1], 1 }

</bundles_post_ra>
